<compile_context>
chip_gen: v7x
topology: tpu7x:2x2x1
jax: 0.10.0
libtpu: 0.0.40
codegen_flags: <defaults>
</compile_context>

<pallas_src>
import functools

import jax
import jax.numpy as jnp
from jax.experimental import pallas as pl
from jax.experimental.pallas import tpu as pltpu


def encoder_kernel(x_ref, m1_ref, m2_ref,
                   w1_ref, b1_ref, g1_ref, be1_ref,
                   w2_ref, b2_ref, g2_ref, be2_ref,
                   o_ref, pad1_ref, pad2_ref,
                   *, N, Lp, pool, Cin, Cout, K, d, padl, padr,
                   L1, L2, P1, P2, M1, M2, eps):
    """Fused forward: maxpool -> (conv+relu+bn) -> (conv+relu+bn).

    x_ref   : (N*Lp, pool*Cin) f32   pool window folded into the lane dim
    m*_ref  : (M*, 1) f32            1.0 on valid rows, 0.0 on inter-sample rows
    w*_ref  : (K, Cin_x, Cout) bf16  conv weights, tap-major
    b*/g*/be*: (1, Cout) f32         conv bias / BN gamma / BN beta
    pad*_ref: bf16 VMEM scratch, zero-padded conv inputs, (N*P*, C)
    o_ref   : (N*L2, Cout) f32
    """
    f32 = jnp.float32
    bf16 = jnp.bfloat16

    # ---- MaxPool1d(pool): pool window on lanes -> (pool-1) full-slab maxes ----
    pooled = x_ref[:, 0:Cin]                                  # (N*Lp, Cin) f32
    for p in range(1, pool):
        pooled = jnp.maximum(pooled, x_ref[:, p * Cin:(p + 1) * Cin])
    pooled = pooled.astype(bf16)          # one full-slab cast (not N partial ones)

    # ---- pack pooled rows into the zero-padded conv-1 input (bf16) -----------
    # Only the pad rows are zero-filled; the interior is overwritten directly.
    # N is small and static, so the unrolled Python loop stays LLO-visible.
    for n in range(N):
        if padl:
            pad1_ref[n * P1:n * P1 + padl, :] = jnp.zeros((padl, Cin), bf16)
        if padr:
            pad1_ref[n * P1 + padl + Lp:(n + 1) * P1, :] = jnp.zeros((padr, Cin), bf16)
        pad1_ref[n * P1 + padl:n * P1 + padl + Lp, :] = pooled[n * Lp:(n + 1) * Lp, :]

    def conv_relu_bn(pad_ref, w_ref, b_ref, g_ref, be_ref, mask, M, count):
        cout = w_ref.shape[2]
        # Conv1d as K dilated taps; each tap is ONE (M, C) @ (C, Cout) MXU
        # matmul over all batch*length rows (bf16 in, f32 accumulation).
        acc = jnp.zeros((M, cout), f32)
        for kk in range(K):
            acc = acc + jnp.dot(pad_ref[kk * d:kk * d + M, :], w_ref[kk],
                                preferred_element_type=f32)
        # Bias + ReLU, then zero the inter-sample junk rows ONCE.  Junk rows are
        # never read downstream, so letting BN's shift land on them is harmless,
        # and the masked slab feeds the batch stats directly (one-pass BN).
        y = jnp.maximum(acc + b_ref[...], 0.0) * mask
        inv_n = 1.0 / count
        mean = jnp.sum(y, axis=0, keepdims=True) * inv_n      # (1, Cout)
        var = jnp.maximum(
            jnp.sum(y * y, axis=0, keepdims=True) * inv_n - mean * mean, 0.0)
        scale = g_ref[...] * jax.lax.rsqrt(var + eps)
        shift = be_ref[...] - mean * scale
        return y * scale + shift

    # ---- SingleConv #1 --------------------------------------------------------
    y1 = conv_relu_bn(pad1_ref, w1_ref, b1_ref, g1_ref, be1_ref,
                      m1_ref[...], M1, float(N * L1))
    y1b = y1.astype(bf16)                  # one full-slab cast before packing

    # ---- SingleConv #2: write conv-1's valid rows straight into pad2 ----------
    for n in range(N):
        if padl:
            pad2_ref[n * P2:n * P2 + padl, :] = jnp.zeros((padl, Cout), bf16)
        if padr:
            pad2_ref[n * P2 + padl + L1:(n + 1) * P2, :] = jnp.zeros((padr, Cout), bf16)
        pad2_ref[n * P2 + padl:n * P2 + padl + L1, :] = y1b[n * P1:n * P1 + L1, :]

    y2 = conv_relu_bn(pad2_ref, w2_ref, b2_ref, g2_ref, be2_ref,
                      m2_ref[...], M2, float(N * L2))

    # ---- gather the valid rows of conv-2 into the dense output ----------------
    for n in range(N):
        o_ref[n * L2:(n + 1) * L2, :] = y2[n * P2:n * P2 + L2, :]


def _resolve_padding(padding, K, d):
    total = d * (K - 1)
    if padding == 'same':
        padl = total // 2
        return padl, total - padl
    if padding == 'valid':
        return 0, 0
    return int(padding), int(padding)


def _padded_bytes(rows, cols, itemsize):
    """Approximate VMEM footprint of a (rows, cols) array incl. tile padding."""
    sub = 8 if itemsize >= 4 else 8 * (4 // itemsize)        # 8 f32 / 16 bf16
    r = -(-rows // sub) * sub
    c = -(-cols // 128) * 128
    return r * c * itemsize


def encoder_forward(x_ncl, params, *, pool, kernel_size, dilation, padding):
    """x_ncl: (N, Cin, L) float32, PyTorch layout.  Returns (N, Cout, L_out)."""
    N, Cin, L = x_ncl.shape
    K, d = kernel_size, dilation
    padl, padr = _resolve_padding(padding, K, d)
    Cout = params['w1'].shape[2]

    Lp = L // pool                       # MaxPool1d output length (floor)
    P1 = Lp + padl + padr                # padded conv-1 input length per sample
    L1 = P1 - d * (K - 1)                # conv-1 output length per sample
    P2 = L1 + padl + padr
    L2 = P2 - d * (K - 1)
    M1 = (N - 1) * P1 + L1               # flattened conv-1 output rows
    M2 = (N - 1) * P2 + L2

    # NCL -> channels-last, crop to a multiple of `pool`, fold the pool window
    # into the lane dim so the in-kernel maxpool is a few full-slab lane maxes.
    x_nlc = jnp.transpose(x_ncl, (0, 2, 1)).astype(jnp.float32)
    x2d = x_nlc[:, :Lp * pool, :].reshape(N * Lp, pool * Cin)

    # validity masks for the flattened (batch*length) conv-output rows
    mask1 = ((jnp.arange(M1) % P1) < L1).astype(jnp.float32).reshape(M1, 1)
    mask2 = ((jnp.arange(M2) % P2) < L2).astype(jnp.float32).reshape(M2, 1)

    w1 = params['w1'].astype(jnp.bfloat16)
    w2 = params['w2'].astype(jnp.bfloat16)
    b1, g1, be1 = (params[k].astype(jnp.float32) for k in ('b1', 'g1', 'be1'))
    b2, g2, be2 = (params[k].astype(jnp.float32) for k in ('b2', 'g2', 'be2'))

    kernel = functools.partial(
        encoder_kernel, N=N, Lp=Lp, pool=pool, Cin=Cin, Cout=Cout,
        K=K, d=d, padl=padl, padr=padr,
        L1=L1, L2=L2, P1=P1, P2=P2, M1=M1, M2=M2, eps=1e-5)

    vmem = pl.BlockSpec(memory_space=pltpu.MemorySpace.VMEM)
    flops = int(2 * K * (M1 * Cin * Cout + M2 * Cout * Cout))
    bytes_accessed = int(
        4 * (x2d.size + mask1.size + mask2.size + N * L2 * Cout
             + b1.size + g1.size + be1.size + b2.size + g2.size + be2.size)
        + 2 * (w1.size + w2.size))

    # Size the scoped-VMEM limit from the layout-padded footprint (inputs,
    # output, bf16 scratch, and the f32 conv-output temporaries), with margin.
    vmem_need = (
        _padded_bytes(N * Lp, pool * Cin, 4)
        + _padded_bytes(M1, 1, 4) + _padded_bytes(M2, 1, 4)
        + _padded_bytes(N * L2, Cout, 4)
        + _padded_bytes(N * P1, Cin, 2) + _padded_bytes(N * P2, Cout, 2)
        + _padded_bytes(M1, Cout, 4) + _padded_bytes(M2, Cout, 4))
    vmem_limit = int(max(32 * 1024 * 1024, min(100 * 1024 * 1024, 2 * vmem_need)))

    out2d = pl.pallas_call(
        kernel,
        out_shape=jax.ShapeDtypeStruct((N * L2, Cout), jnp.float32),
        in_specs=[vmem] * 11,
        out_specs=vmem,
        scratch_shapes=[
            pltpu.VMEM((N * P1, Cin), jnp.bfloat16),    # padded conv-1 input
            pltpu.VMEM((N * P2, Cout), jnp.bfloat16),   # padded conv-2 input
        ],
        compiler_params=pltpu.CompilerParams(vmem_limit_bytes=vmem_limit),
        cost_estimate=pl.CostEstimate(
            flops=flops, transcendentals=2 * Cout, bytes_accessed=bytes_accessed),
    )(x2d, mask1, mask2, w1, b1, g1, be1, w2, b2, g2, be2)

    return jnp.transpose(out2d.reshape(N, L2, Cout), (0, 2, 1))


# ---------------- pure-JAX reference (mirrors PyTorch semantics) ----------------
# Conv operands are cast to bf16 (with f32 accumulation), matching the kernel's
# matmul precision; everything else is f32.
def _ref_single_conv(x_nlc, w, b, g, be, K, d, padl, padr, eps=1e-5):
    xb = x_nlc.astype(jnp.bfloat16)
    wb = w.astype(jnp.bfloat16)
    xp = jnp.pad(xb, ((0, 0), (padl, padr), (0, 0)))
    Lout = xp.shape[1] - d * (K - 1)
    acc = jnp.zeros((x_nlc.shape[0], Lout, w.shape[2]), jnp.float32)
    for kk in range(K):
        acc = acc + jnp.einsum('nlc,cd->nld', xp[:, kk * d:kk * d + Lout, :], wb[kk],
                               preferred_element_type=jnp.float32)
    y = jnp.maximum(acc + b, 0.0)
    mean = jnp.mean(y, axis=(0, 1), keepdims=True)
    var = jnp.mean((y - mean) ** 2, axis=(0, 1), keepdims=True)
    return (y - mean) / jnp.sqrt(var + eps) * g + be


def encoder_reference(x_ncl, params, *, pool, kernel_size, dilation, padding):
    K, d = kernel_size, dilation
    padl, padr = _resolve_padding(padding, K, d)
    x = jnp.transpose(x_ncl, (0, 2, 1)).astype(jnp.float32)
    N, L, Cin = x.shape
    Lp = L // pool
    xp = jnp.max(x[:, :Lp * pool, :].reshape(N, Lp, pool, Cin), axis=2)   # MaxPool1d
    y1 = _ref_single_conv(xp, params['w1'], params['b1'], params['g1'], params['be1'],
                          K, d, padl, padr)
    y2 = _ref_single_conv(y1, params['w2'], params['b2'], params['g2'], params['be2'],
                          K, d, padl, padr)
    return jnp.transpose(y2, (0, 2, 1))


if __name__ == "__main__":
    # Small shapes consistent with Encoder(in_channels=4, out_channels=8, pool=2,
    #                                      activation=ReLU, kernel_size=3,
    #                                      padding='same', dilation=2)
    N, Cin, Cout, L = 2, 4, 8, 16
    pool, K, dilation, padding = 2, 3, 2, 'same'

    key = jax.random.PRNGKey(0)
    ks = jax.random.split(key, 9)
    x = jax.random.normal(ks[0], (N, Cin, L), jnp.float32)          # NCL, PyTorch layout

    # Deterministic synthetic parameters (PyTorch Conv1d weight (Cout, Cin, K)
    # is stored here tap-major as (K, Cin, Cout) == transpose(w_pt, (2, 1, 0))).
    params = {
        'w1': 0.2 * jax.random.normal(ks[1], (K, Cin, Cout), jnp.float32),
        'b1': 0.1 * jax.random.normal(ks[2], (1, Cout), jnp.float32),
        'g1': 1.0 + 0.1 * jax.random.normal(ks[3], (1, Cout), jnp.float32),
        'be1': 0.1 * jax.random.normal(ks[4], (1, Cout), jnp.float32),
        'w2': 0.2 * jax.random.normal(ks[5], (K, Cout, Cout), jnp.float32),
        'b2': 0.1 * jax.random.normal(ks[6], (1, Cout), jnp.float32),
        'g2': 1.0 + 0.1 * jax.random.normal(ks[7], (1, Cout), jnp.float32),
        'be2': 0.1 * jax.random.normal(ks[8], (1, Cout), jnp.float32),
    }

    out = encoder_forward(x, params, pool=pool, kernel_size=K,
                          dilation=dilation, padding=padding)
    out = jax.block_until_ready(out)

    ref = encoder_reference(x, params, pool=pool, kernel_size=K,
                            dilation=dilation, padding=padding)
    ref = jax.block_until_ready(ref)

    # Shape check (this equality only holds for padding='same'; test artifact).
    assert out.shape == (N, Cout, (L // pool)), f"bad shape {out.shape}"
    assert jnp.allclose(out, ref, rtol=5e-3, atol=5e-3), \
        f"max abs err {jnp.max(jnp.abs(out - ref))}"
    print("KERNEL_OK")
</pallas_src>

<mosaic_0001>
module attributes {stable_mosaic.version = 11 : i64} {
  func.func @encoder_kernel(%arg0: memref<16x8xf32, #tpu.memory_space<vmem>>, %arg1: memref<20x1xf32, #tpu.memory_space<vmem>>, %arg2: memref<20x1xf32, #tpu.memory_space<vmem>>, %arg3: memref<3x4x8xbf16, #tpu.memory_space<vmem>>, %arg4: memref<1x8xf32, #tpu.memory_space<vmem>>, %arg5: memref<1x8xf32, #tpu.memory_space<vmem>>, %arg6: memref<1x8xf32, #tpu.memory_space<vmem>>, %arg7: memref<3x8x8xbf16, #tpu.memory_space<vmem>>, %arg8: memref<1x8xf32, #tpu.memory_space<vmem>>, %arg9: memref<1x8xf32, #tpu.memory_space<vmem>>, %arg10: memref<1x8xf32, #tpu.memory_space<vmem>>, %arg11: memref<16x8xf32, #tpu.memory_space<vmem>>, %arg12: memref<24x4xbf16, #tpu.memory_space<vmem>>, %arg13: memref<24x8xbf16, #tpu.memory_space<vmem>>) attributes {dimension_semantics = [], scalar_prefetch = 0 : i64, scratch_operands = 2 : i64, tpu.core_type = #tpu.core_type<tc>} {
    %c0 = arith.constant 0 : index
    %c0_0 = arith.constant 0 : index
    %0 = vector.load %arg0[%c0, %c0_0] : memref<16x8xf32, #tpu.memory_space<vmem>>, vector<16x4xf32>
    %c0_1 = arith.constant 0 : index
    %c4 = arith.constant 4 : index
    %1 = vector.load %arg0[%c0_1, %c4] : memref<16x8xf32, #tpu.memory_space<vmem>>, vector<16x4xf32>
    %2 = arith.maximumf %0, %1 : vector<16x4xf32>
    %3 = arith.truncf %2 : vector<16x4xf32> to vector<16x4xbf16>
    %cst = arith.constant 0.000000e+00 : bf16
    %4 = vector.broadcast %cst : bf16 to vector<2x4xbf16>
    %c0_2 = arith.constant 0 : index
    %c0_3 = arith.constant 0 : index
    %5 = vector.load %arg12[%c0_2, %c0_3] : memref<24x4xbf16, #tpu.memory_space<vmem>>, vector<2x4xbf16>
    tpu.vector_store %arg12[%c0_2, %c0_3], %4 {strides = array<i32>} : memref<24x4xbf16, #tpu.memory_space<vmem>>, vector<2x4xbf16>,
    %cst_4 = arith.constant 0.000000e+00 : bf16
    %6 = vector.broadcast %cst_4 : bf16 to vector<2x4xbf16>
    %c10 = arith.constant 10 : index
    %c0_5 = arith.constant 0 : index
    %7 = vector.load %arg12[%c10, %c0_5] : memref<24x4xbf16, #tpu.memory_space<vmem>>, vector<2x4xbf16>
    tpu.vector_store %arg12[%c10, %c0_5], %6 {strides = array<i32>} : memref<24x4xbf16, #tpu.memory_space<vmem>>, vector<2x4xbf16>,
    %8 = vector.extract_strided_slice %3 {offsets = [0, 0], sizes = [8, 4], strides = [1, 1]} : vector<16x4xbf16> to vector<8x4xbf16>
    %c2 = arith.constant 2 : index
    %c0_6 = arith.constant 0 : index
    %9 = vector.load %arg12[%c2, %c0_6] : memref<24x4xbf16, #tpu.memory_space<vmem>>, vector<8x4xbf16>
    tpu.vector_store %arg12[%c2, %c0_6], %8 {strides = array<i32>} : memref<24x4xbf16, #tpu.memory_space<vmem>>, vector<8x4xbf16>,
    %cst_7 = arith.constant 0.000000e+00 : bf16
    %10 = vector.broadcast %cst_7 : bf16 to vector<2x4xbf16>
    %c12 = arith.constant 12 : index
    %c0_8 = arith.constant 0 : index
    %11 = vector.load %arg12[%c12, %c0_8] : memref<24x4xbf16, #tpu.memory_space<vmem>>, vector<2x4xbf16>
    tpu.vector_store %arg12[%c12, %c0_8], %10 {strides = array<i32>} : memref<24x4xbf16, #tpu.memory_space<vmem>>, vector<2x4xbf16>,
    %cst_9 = arith.constant 0.000000e+00 : bf16
    %12 = vector.broadcast %cst_9 : bf16 to vector<2x4xbf16>
    %c22 = arith.constant 22 : index
    %c0_10 = arith.constant 0 : index
    %13 = vector.load %arg12[%c22, %c0_10] : memref<24x4xbf16, #tpu.memory_space<vmem>>, vector<2x4xbf16>
    tpu.vector_store %arg12[%c22, %c0_10], %12 {strides = array<i32>} : memref<24x4xbf16, #tpu.memory_space<vmem>>, vector<2x4xbf16>,
    %14 = vector.extract_strided_slice %3 {offsets = [8, 0], sizes = [8, 4], strides = [1, 1]} : vector<16x4xbf16> to vector<8x4xbf16>
    %c14 = arith.constant 14 : index
    %c0_11 = arith.constant 0 : index
    %15 = vector.load %arg12[%c14, %c0_11] : memref<24x4xbf16, #tpu.memory_space<vmem>>, vector<8x4xbf16>
    tpu.vector_store %arg12[%c14, %c0_11], %14 {strides = array<i32>} : memref<24x4xbf16, #tpu.memory_space<vmem>>, vector<8x4xbf16>,
    %c0_12 = arith.constant 0 : index
    %c0_13 = arith.constant 0 : index
    %16 = vector.load %arg1[%c0_12, %c0_13] : memref<20x1xf32, #tpu.memory_space<vmem>>, vector<20x1xf32>
    %cst_14 = arith.constant 0.000000e+00 : f32
    %17 = vector.broadcast %cst_14 : f32 to vector<20x8xf32>
    %c0_15 = arith.constant 0 : index
    %c0_16 = arith.constant 0 : index
    %18 = vector.load %arg12[%c0_15, %c0_16] : memref<24x4xbf16, #tpu.memory_space<vmem>>, vector<20x4xbf16>
    %c0_17 = arith.constant 0 : index
    %c0_18 = arith.constant 0 : index
    %c0_19 = arith.constant 0 : index
    %19 = vector.load %arg3[%c0_17, %c0_18, %c0_19] : memref<3x4x8xbf16, #tpu.memory_space<vmem>>, vector<1x4x8xbf16>
    %20 = vector.shape_cast %19 : vector<1x4x8xbf16> to vector<4x8xbf16>
    %cst_20 = arith.constant dense<0.000000e+00> : vector<20x8xf32>
    %21 = tpu.matmul %18, %20, %cst_20 {dimension_numbers = #tpu.dot_dimension_numbers<[1], [0], [0], [1], [0, 0, 1, 1], [], []>} : vector<20x4xbf16>, vector<4x8xbf16>, vector<20x8xf32> -> vector<20x8xf32>
    %22 = arith.addf %17, %21 : vector<20x8xf32>
    %c2_21 = arith.constant 2 : index
    %c0_22 = arith.constant 0 : index
    %23 = vector.load %arg12[%c2_21, %c0_22] : memref<24x4xbf16, #tpu.memory_space<vmem>>, vector<20x4xbf16>
    %c1 = arith.constant 1 : index
    %c0_23 = arith.constant 0 : index
    %c0_24 = arith.constant 0 : index
    %24 = vector.load %arg3[%c1, %c0_23, %c0_24] : memref<3x4x8xbf16, #tpu.memory_space<vmem>>, vector<1x4x8xbf16>
    %25 = vector.shape_cast %24 : vector<1x4x8xbf16> to vector<4x8xbf16>
    %cst_25 = arith.constant dense<0.000000e+00> : vector<20x8xf32>
    %26 = tpu.matmul %23, %25, %cst_25 {dimension_numbers = #tpu.dot_dimension_numbers<[1], [0], [0], [1], [0, 0, 1, 1], [], []>} : vector<20x4xbf16>, vector<4x8xbf16>, vector<20x8xf32> -> vector<20x8xf32>
    %27 = arith.addf %22, %26 : vector<20x8xf32>
    %c4_26 = arith.constant 4 : index
    %c0_27 = arith.constant 0 : index
    %28 = vector.load %arg12[%c4_26, %c0_27] : memref<24x4xbf16, #tpu.memory_space<vmem>>, vector<20x4xbf16>
    %c2_28 = arith.constant 2 : index
    %c0_29 = arith.constant 0 : index
    %c0_30 = arith.constant 0 : index
    %29 = vector.load %arg3[%c2_28, %c0_29, %c0_30] : memref<3x4x8xbf16, #tpu.memory_space<vmem>>, vector<1x4x8xbf16>
    %30 = vector.shape_cast %29 : vector<1x4x8xbf16> to vector<4x8xbf16>
    %cst_31 = arith.constant dense<0.000000e+00> : vector<20x8xf32>
    %31 = tpu.matmul %28, %30, %cst_31 {dimension_numbers = #tpu.dot_dimension_numbers<[1], [0], [0], [1], [0, 0, 1, 1], [], []>} : vector<20x4xbf16>, vector<4x8xbf16>, vector<20x8xf32> -> vector<20x8xf32>
    %32 = arith.addf %27, %31 : vector<20x8xf32>
    %c0_32 = arith.constant 0 : index
    %c0_33 = arith.constant 0 : index
    %33 = vector.load %arg4[%c0_32, %c0_33] : memref<1x8xf32, #tpu.memory_space<vmem>>, vector<1x8xf32>
    %34 = vector.broadcast %33 : vector<1x8xf32> to vector<20x8xf32>
    %35 = arith.addf %32, %34 : vector<20x8xf32>
    %cst_34 = arith.constant 0.000000e+00 : f32
    %36 = vector.broadcast %cst_34 : f32 to vector<20x8xf32>
    %37 = arith.maximumf %35, %36 : vector<20x8xf32>
    %38 = vector.broadcast %16 : vector<20x1xf32> to vector<20x8xf32>
    %39 = arith.mulf %37, %38 : vector<20x8xf32>
    %cst_35 = arith.constant dense<0.000000e+00> : vector<8xf32>
    %40 = vector.multi_reduction <add>, %39, %cst_35 [0] : vector<20x8xf32> to vector<8xf32>
    %41 = vector.shape_cast %40 : vector<8xf32> to vector<1x8xf32>
    %cst_36 = arith.constant 6.250000e-02 : f32
    %42 = vector.broadcast %cst_36 : f32 to vector<1x8xf32>
    %43 = arith.mulf %41, %42 : vector<1x8xf32>
    %44 = arith.mulf %39, %39 : vector<20x8xf32>
    %cst_37 = arith.constant dense<0.000000e+00> : vector<8xf32>
    %45 = vector.multi_reduction <add>, %44, %cst_37 [0] : vector<20x8xf32> to vector<8xf32>
    %46 = vector.shape_cast %45 : vector<8xf32> to vector<1x8xf32>
    %cst_38 = arith.constant 6.250000e-02 : f32
    %47 = vector.broadcast %cst_38 : f32 to vector<1x8xf32>
    %48 = arith.mulf %46, %47 : vector<1x8xf32>
    %49 = arith.mulf %43, %43 : vector<1x8xf32>
    %50 = arith.subf %48, %49 : vector<1x8xf32>
    %cst_39 = arith.constant 0.000000e+00 : f32
    %51 = vector.broadcast %cst_39 : f32 to vector<1x8xf32>
    %52 = arith.maximumf %50, %51 : vector<1x8xf32>
    %c0_40 = arith.constant 0 : index
    %c0_41 = arith.constant 0 : index
    %53 = vector.load %arg5[%c0_40, %c0_41] : memref<1x8xf32, #tpu.memory_space<vmem>>, vector<1x8xf32>
    %cst_42 = arith.constant 9.99999974E-6 : f32
    %54 = vector.broadcast %cst_42 : f32 to vector<1x8xf32>
    %55 = arith.addf %52, %54 : vector<1x8xf32>
    %56 = math.rsqrt %55 : vector<1x8xf32>
    %57 = arith.mulf %53, %56 : vector<1x8xf32>
    %c0_43 = arith.constant 0 : index
    %c0_44 = arith.constant 0 : index
    %58 = vector.load %arg6[%c0_43, %c0_44] : memref<1x8xf32, #tpu.memory_space<vmem>>, vector<1x8xf32>
    %59 = arith.mulf %43, %57 : vector<1x8xf32>
    %60 = arith.subf %58, %59 : vector<1x8xf32>
    %61 = vector.broadcast %57 : vector<1x8xf32> to vector<20x8xf32>
    %62 = arith.mulf %39, %61 : vector<20x8xf32>
    %63 = vector.broadcast %60 : vector<1x8xf32> to vector<20x8xf32>
    %64 = arith.addf %62, %63 : vector<20x8xf32>
    %65 = arith.truncf %64 : vector<20x8xf32> to vector<20x8xbf16>
    %cst_45 = arith.constant 0.000000e+00 : bf16
    %66 = vector.broadcast %cst_45 : bf16 to vector<2x8xbf16>
    %c0_46 = arith.constant 0 : index
    %c0_47 = arith.constant 0 : index
    %67 = vector.load %arg13[%c0_46, %c0_47] : memref<24x8xbf16, #tpu.memory_space<vmem>>, vector<2x8xbf16>
    tpu.vector_store %arg13[%c0_46, %c0_47], %66 {strides = array<i32>} : memref<24x8xbf16, #tpu.memory_space<vmem>>, vector<2x8xbf16>,
    %cst_48 = arith.constant 0.000000e+00 : bf16
    %68 = vector.broadcast %cst_48 : bf16 to vector<2x8xbf16>
    %c10_49 = arith.constant 10 : index
    %c0_50 = arith.constant 0 : index
    %69 = vector.load %arg13[%c10_49, %c0_50] : memref<24x8xbf16, #tpu.memory_space<vmem>>, vector<2x8xbf16>
    tpu.vector_store %arg13[%c10_49, %c0_50], %68 {strides = array<i32>} : memref<24x8xbf16, #tpu.memory_space<vmem>>, vector<2x8xbf16>,
    %70 = vector.extract_strided_slice %65 {offsets = [0, 0], sizes = [8, 8], strides = [1, 1]} : vector<20x8xbf16> to vector<8x8xbf16>
    %c2_51 = arith.constant 2 : index
    %c0_52 = arith.constant 0 : index
    %71 = vector.load %arg13[%c2_51, %c0_52] : memref<24x8xbf16, #tpu.memory_space<vmem>>, vector<8x8xbf16>
    tpu.vector_store %arg13[%c2_51, %c0_52], %70 {strides = array<i32>} : memref<24x8xbf16, #tpu.memory_space<vmem>>, vector<8x8xbf16>,
    %cst_53 = arith.constant 0.000000e+00 : bf16
    %72 = vector.broadcast %cst_53 : bf16 to vector<2x8xbf16>
    %c12_54 = arith.constant 12 : index
    %c0_55 = arith.constant 0 : index
    %73 = vector.load %arg13[%c12_54, %c0_55] : memref<24x8xbf16, #tpu.memory_space<vmem>>, vector<2x8xbf16>
    tpu.vector_store %arg13[%c12_54, %c0_55], %72 {strides = array<i32>} : memref<24x8xbf16, #tpu.memory_space<vmem>>, vector<2x8xbf16>,
    %cst_56 = arith.constant 0.000000e+00 : bf16
    %74 = vector.broadcast %cst_56 : bf16 to vector<2x8xbf16>
    %c22_57 = arith.constant 22 : index
    %c0_58 = arith.constant 0 : index
    %75 = vector.load %arg13[%c22_57, %c0_58] : memref<24x8xbf16, #tpu.memory_space<vmem>>, vector<2x8xbf16>
    tpu.vector_store %arg13[%c22_57, %c0_58], %74 {strides = array<i32>} : memref<24x8xbf16, #tpu.memory_space<vmem>>, vector<2x8xbf16>,
    %76 = vector.extract_strided_slice %65 {offsets = [12, 0], sizes = [8, 8], strides = [1, 1]} : vector<20x8xbf16> to vector<8x8xbf16>
    %c14_59 = arith.constant 14 : index
    %c0_60 = arith.constant 0 : index
    %77 = vector.load %arg13[%c14_59, %c0_60] : memref<24x8xbf16, #tpu.memory_space<vmem>>, vector<8x8xbf16>
    tpu.vector_store %arg13[%c14_59, %c0_60], %76 {strides = array<i32>} : memref<24x8xbf16, #tpu.memory_space<vmem>>, vector<8x8xbf16>,
    %c0_61 = arith.constant 0 : index
    %c0_62 = arith.constant 0 : index
    %78 = vector.load %arg2[%c0_61, %c0_62] : memref<20x1xf32, #tpu.memory_space<vmem>>, vector<20x1xf32>
    %cst_63 = arith.constant 0.000000e+00 : f32
    %79 = vector.broadcast %cst_63 : f32 to vector<20x8xf32>
    %c0_64 = arith.constant 0 : index
    %c0_65 = arith.constant 0 : index
    %80 = vector.load %arg13[%c0_64, %c0_65] : memref<24x8xbf16, #tpu.memory_space<vmem>>, vector<20x8xbf16>
    %c0_66 = arith.constant 0 : index
    %c0_67 = arith.constant 0 : index
    %c0_68 = arith.constant 0 : index
    %81 = vector.load %arg7[%c0_66, %c0_67, %c0_68] : memref<3x8x8xbf16, #tpu.memory_space<vmem>>, vector<1x8x8xbf16>
    %82 = vector.shape_cast %81 : vector<1x8x8xbf16> to vector<8x8xbf16>
    %cst_69 = arith.constant dense<0.000000e+00> : vector<20x8xf32>
    %83 = tpu.matmul %80, %82, %cst_69 {dimension_numbers = #tpu.dot_dimension_numbers<[1], [0], [0], [1], [0, 0, 1, 1], [], []>} : vector<20x8xbf16>, vector<8x8xbf16>, vector<20x8xf32> -> vector<20x8xf32>
    %84 = arith.addf %79, %83 : vector<20x8xf32>
    %c2_70 = arith.constant 2 : index
    %c0_71 = arith.constant 0 : index
    %85 = vector.load %arg13[%c2_70, %c0_71] : memref<24x8xbf16, #tpu.memory_space<vmem>>, vector<20x8xbf16>
    %c1_72 = arith.constant 1 : index
    %c0_73 = arith.constant 0 : index
    %c0_74 = arith.constant 0 : index
    %86 = vector.load %arg7[%c1_72, %c0_73, %c0_74] : memref<3x8x8xbf16, #tpu.memory_space<vmem>>, vector<1x8x8xbf16>
    %87 = vector.shape_cast %86 : vector<1x8x8xbf16> to vector<8x8xbf16>
    %cst_75 = arith.constant dense<0.000000e+00> : vector<20x8xf32>
    %88 = tpu.matmul %85, %87, %cst_75 {dimension_numbers = #tpu.dot_dimension_numbers<[1], [0], [0], [1], [0, 0, 1, 1], [], []>} : vector<20x8xbf16>, vector<8x8xbf16>, vector<20x8xf32> -> vector<20x8xf32>
    %89 = arith.addf %84, %88 : vector<20x8xf32>
    %c4_76 = arith.constant 4 : index
    %c0_77 = arith.constant 0 : index
    %90 = vector.load %arg13[%c4_76, %c0_77] : memref<24x8xbf16, #tpu.memory_space<vmem>>, vector<20x8xbf16>
    %c2_78 = arith.constant 2 : index
    %c0_79 = arith.constant 0 : index
    %c0_80 = arith.constant 0 : index
    %91 = vector.load %arg7[%c2_78, %c0_79, %c0_80] : memref<3x8x8xbf16, #tpu.memory_space<vmem>>, vector<1x8x8xbf16>
    %92 = vector.shape_cast %91 : vector<1x8x8xbf16> to vector<8x8xbf16>
    %cst_81 = arith.constant dense<0.000000e+00> : vector<20x8xf32>
    %93 = tpu.matmul %90, %92, %cst_81 {dimension_numbers = #tpu.dot_dimension_numbers<[1], [0], [0], [1], [0, 0, 1, 1], [], []>} : vector<20x8xbf16>, vector<8x8xbf16>, vector<20x8xf32> -> vector<20x8xf32>
    %94 = arith.addf %89, %93 : vector<20x8xf32>
    %c0_82 = arith.constant 0 : index
    %c0_83 = arith.constant 0 : index
    %95 = vector.load %arg8[%c0_82, %c0_83] : memref<1x8xf32, #tpu.memory_space<vmem>>, vector<1x8xf32>
    %96 = vector.broadcast %95 : vector<1x8xf32> to vector<20x8xf32>
    %97 = arith.addf %94, %96 : vector<20x8xf32>
    %cst_84 = arith.constant 0.000000e+00 : f32
    %98 = vector.broadcast %cst_84 : f32 to vector<20x8xf32>
    %99 = arith.maximumf %97, %98 : vector<20x8xf32>
    %100 = vector.broadcast %78 : vector<20x1xf32> to vector<20x8xf32>
    %101 = arith.mulf %99, %100 : vector<20x8xf32>
    %cst_85 = arith.constant dense<0.000000e+00> : vector<8xf32>
    %102 = vector.multi_reduction <add>, %101, %cst_85 [0] : vector<20x8xf32> to vector<8xf32>
    %103 = vector.shape_cast %102 : vector<8xf32> to vector<1x8xf32>
    %cst_86 = arith.constant 6.250000e-02 : f32
    %104 = vector.broadcast %cst_86 : f32 to vector<1x8xf32>
    %105 = arith.mulf %103, %104 : vector<1x8xf32>
    %106 = arith.mulf %101, %101 : vector<20x8xf32>
    %cst_87 = arith.constant dense<0.000000e+00> : vector<8xf32>
    %107 = vector.multi_reduction <add>, %106, %cst_87 [0] : vector<20x8xf32> to vector<8xf32>
    %108 = vector.shape_cast %107 : vector<8xf32> to vector<1x8xf32>
    %cst_88 = arith.constant 6.250000e-02 : f32
    %109 = vector.broadcast %cst_88 : f32 to vector<1x8xf32>
    %110 = arith.mulf %108, %109 : vector<1x8xf32>
    %111 = arith.mulf %105, %105 : vector<1x8xf32>
    %112 = arith.subf %110, %111 : vector<1x8xf32>
    %cst_89 = arith.constant 0.000000e+00 : f32
    %113 = vector.broadcast %cst_89 : f32 to vector<1x8xf32>
    %114 = arith.maximumf %112, %113 : vector<1x8xf32>
    %c0_90 = arith.constant 0 : index
    %c0_91 = arith.constant 0 : index
    %115 = vector.load %arg9[%c0_90, %c0_91] : memref<1x8xf32, #tpu.memory_space<vmem>>, vector<1x8xf32>
    %cst_92 = arith.constant 9.99999974E-6 : f32
    %116 = vector.broadcast %cst_92 : f32 to vector<1x8xf32>
    %117 = arith.addf %114, %116 : vector<1x8xf32>
    %118 = math.rsqrt %117 : vector<1x8xf32>
    %119 = arith.mulf %115, %118 : vector<1x8xf32>
    %c0_93 = arith.constant 0 : index
    %c0_94 = arith.constant 0 : index
    %120 = vector.load %arg10[%c0_93, %c0_94] : memref<1x8xf32, #tpu.memory_space<vmem>>, vector<1x8xf32>
    %121 = arith.mulf %105, %119 : vector<1x8xf32>
    %122 = arith.subf %120, %121 : vector<1x8xf32>
    %123 = vector.broadcast %119 : vector<1x8xf32> to vector<20x8xf32>
    %124 = arith.mulf %101, %123 : vector<20x8xf32>
    %125 = vector.broadcast %122 : vector<1x8xf32> to vector<20x8xf32>
    %126 = arith.addf %124, %125 : vector<20x8xf32>
    %127 = vector.extract_strided_slice %126 {offsets = [0, 0], sizes = [8, 8], strides = [1, 1]} : vector<20x8xf32> to vector<8x8xf32>
    %c0_95 = arith.constant 0 : index
    %c0_96 = arith.constant 0 : index
    %128 = vector.load %arg11[%c0_95, %c0_96] : memref<16x8xf32, #tpu.memory_space<vmem>>, vector<8x8xf32>
    tpu.vector_store %arg11[%c0_95, %c0_96], %127 {strides = array<i32>} : memref<16x8xf32, #tpu.memory_space<vmem>>, vector<8x8xf32>,
    %129 = vector.extract_strided_slice %126 {offsets = [12, 0], sizes = [8, 8], strides = [1, 1]} : vector<20x8xf32> to vector<8x8xf32>
    %c8 = arith.constant 8 : index
    %c0_97 = arith.constant 0 : index
    %130 = vector.load %arg11[%c8, %c0_97] : memref<16x8xf32, #tpu.memory_space<vmem>>, vector<8x8xf32>
    tpu.vector_store %arg11[%c8, %c0_97], %129 {strides = array<i32>} : memref<16x8xf32, #tpu.memory_space<vmem>>, vector<8x8xf32>,
    return
  }
}

</mosaic_0001>

<bundles_post_ra>
// kernel: tpu_custom_call.1
= control target key start
LH: loop header
LB: loop body
LE: loop exit
PB: predicated region body
PF: predicated region fallthrough
CT: control target
= control target key end

     0   :  { %vm52_vm0 = vcmask 24576   ;;  %vm68_vm1 = vcmask 27651   ;;  %v858_v2 = vmov 0   ;;  %vm109_vm2 = vcmask 1041408   ;;  %s1048_s0 = inlined_call_operand.vmem [shape: f32[16,8], index: 0, kind: input, shape index: {}]   ;;  %s1049_s3 = inlined_call_operand.vmem [shape: bf16[3,4,8], index: 3, kind: input, shape index: {}]   ;;  %s1050_s1 = inlined_call_operand.vmem [shape: f32[20,1], index: 1, kind: input, shape index: {}]   ;;  %s1051_s2 = inlined_call_operand.vmem [shape: f32[20,1], index: 2, kind: input, shape index: {}]   ;;  %s1052_s7 = inlined_call_operand.vmem [shape: bf16[3,8,8], index: 7, kind: input, shape index: {}]   ;;  %s1053_s4 = inlined_call_operand.vmem [shape: f32[1,8], index: 4, kind: input, shape index: {}]   ;;  %s1054_s5 = inlined_call_operand.vmem [shape: f32[1,8], index: 5, kind: input, shape index: {}]   ;;  %s1055_s6 = inlined_call_operand.vmem [shape: f32[1,8], index: 6, kind: input, shape index: {}]   ;;  %s1056_s8 = inlined_call_operand.vmem [shape: f32[1,8], index: 8, kind: input, shape index: {}]   ;;  %s1057_s9 = inlined_call_operand.vmem [shape: f32[1,8], index: 9, kind: input, shape index: {}]   ;;  %s1058_s10 = inlined_call_operand.vmem [shape: f32[1,8], index: 10, kind: input, shape index: {}]   ;;  %s1059_s11 = inlined_call_operand.vmem [shape: f32[16,8], index: 11, kind: output, shape index: {}]  }
   0x1   :  { %v39_v0 = vld [vmem:[%s1048_s0] sm:$0xff]  ;;  %v40_v1 = vld [vmem:[%s1048_s0 + $0x8] sm:$0xff]  ;;  %53 = vst.msk [vmem:[#allocation2] sm:$0x1] %vm52_vm0, %v858_v2  ;;  %vm54_vm3 = vcmask 25601   ;;  %vm66_vm4 = vcmask 26626   ;;  %841 = vset.pattern.permute.xlu1 %v858_v2  ;;  %840 = vset.pattern.permute.xlu0 %v858_v2 }
   0x2   :  { %v835_v3 = vpack.i.bf16 %v40_v1, %v39_v0  ;;  %v85_v4 = vld [vmem:[%s1049_s3] sm:$0x3]  ;;  %v735_v5 = vld [vmem:[%s1049_s3 + $0x2] sm:$0x3]  ;;  %55 = vst.msk [vmem:[#allocation2 + $0x4] sm:$0x2] %vm54_vm3, %v858_v2 }
   0x3   :  { %67 = vst.msk [vmem:[#allocation2 + $0x4] sm:$0x4] %vm66_vm4, %v858_v2  ;;  %828 = vmatprep.subr.msk.bf16.mxu1 %vm109_vm2, %v85_v4  ;;  %v174_v6 = vsel %vm109_vm2, %v85_v4, 0  ;;  %827 = vmatprep.subr.msk.bf16.mxu0 %vm109_vm2, %v735_v5  ;;  %v111_v7 = vsel %vm109_vm2, %v735_v5, 0  ;;  %s859_s0 = smov 124   ;;  %v80_v10 = vld [vmem:[%s1050_s1 + $0x8] sm:$0xff] }
   0x4   :  { %836 = vrot.lane.b32.xlu0 %v835_v3, %s859_s0  ;;  %798 = vmatpush3.bf16.msra.mxu1 %v174_v6  ;;  %v744_v8 = vld [vmem:[%s1049_s3 + $0x4] sm:$0x3]  ;;  %v81_v12 = vld [vmem:[%s1050_s1 + $0x10] sm:$0xf]  ;;  %v424_v13 = vld [vmem:[%s1051_s2 + $0x8] sm:$0xff]  ;;  %vm63_vm5 = vcmask 27649  }
   0x5   :  { %792 = vmatpush3.bf16.msra.mxu0 %v111_v7  ;;  %v245_v9 = vsel %vm109_vm2, %v744_v8, 0  ;;  %318 = vperm.xlu1 %841, %v80_v10   ;;  %v79_v11 = vld [vmem:[%s1050_s1] sm:$0xff]  ;;  %v425_v15 = vld [vmem:[%s1051_s2 + $0x10] sm:$0xf]  ;;  %vm77_vm6 = vcmask 26624   ;;  %vm102_vm7 = vcmask 31744  }
   0x6   :  { %829 = vmatprep.subr.msk.bf16.mxu0 %vm109_vm2, %v744_v8  ;;  %v423_v14 = vld [vmem:[%s1051_s2] sm:$0xff]  ;;  %vm98_vm8 = vcmask 1046528   ;;  %vm234_vm9 = vcmask 1045504   ;;  %vm388_vm10 = vcmask 57344   ;;  %vm404_vm11 = vcmask 60419  }
   0x7   :  { %389 = vst.msk [vmem:[#allocation3] sm:$0x1] %vm388_vm10, %v858_v2  ;;  %vm451_vm12 = vcmask 1043456   ;;  %vm390_vm13 = vcmask 58369   ;;  %vm402_vm14 = vcmask 59394   ;;  %vm329_vm15 = vcmask 64512  }
   0x8   :  { %313 = vperm.xlu0 %840, %v79_v11   ;;  %v753_v43 = vld [vmem:[%s1052_s7 + $0x4] sm:$0xf]  ;;  %v429_v44 = vld [vmem:[%s1052_s7] sm:$0xf]  ;;  %391 = vst.msk [vmem:[#allocation3 + $0x4] sm:$0x2] %vm390_vm13, %v858_v2 }
   0x9   :  { %323 = vperm.xlu1 %841, %v81_v12   ;;  %403 = vst.msk [vmem:[#allocation3 + $0x4] sm:$0x4] %vm402_vm14, %v858_v2  ;;  %830 = vmatprep.subr.msk.bf16.mxu1 %vm451_vm12, %v753_v43  ;;  %v453_v45 = vsel %vm451_vm12, %v753_v43, 0  ;;  %v516_v46 = vsel %vm451_vm12, %v429_v44, 0  ;;  %v762_v47 = vld [vmem:[%s1052_s7 + $0x8] sm:$0xf] }
   0xa   :  { %v988_v48 = vsel %vm451_vm12, %v762_v47, 0  ;;  %v749_v61 = vld [vmem:[%s1053_s4] ss:$0 sm:$0xff]  ;;  %vm412_vm2 = vcmask 1044484   ;;  %vm399_vm3 = vcmask 60417  }
   0xc   :  { %659 = vperm.xlu0 %840, %v424_v13  }
   0xd   :  { %654 = vperm.xlu1 %841, %v423_v14  }
  0x11   :  { %664 = vperm.xlu1 %841, %v425_v15  }
  0x76   :  { %v837_v16 = vpop.permute.xlu0 %836 }
  0x77   :  { %v839_v17 = vunpack.i.h.bf16 %v837_v16  ;;  %v838_v18 = vunpack.i.l.bf16 %v837_v16 }
  0x79   :  { %v50_v19 = vmax.f32 %v40_v1, %v839_v17  ;;  %v49_v20 = vmax.f32 %v39_v0, %v838_v18 }
  0x7b   :  { %v769_v21 = vpack.c.bf16 %v50_v19, %v50_v19  ;;  %v768_v22 = vpack.c.bf16 %v49_v20, %v49_v20 }
  0x7d   :  { %v72_v23 = vrot.slane %v769_v21, 5  ;;  %v59_v24 = vrot.slane %v768_v22, 7 }
  0x7f   :  { %v73_v25 = vrot.slane %v72_v23, 4  ;;  %76 = vst.msk [vmem:[#allocation2 + $0x4] sm:$0x8] %vm68_vm1, %v72_v23  ;;  %v60_v26 = vrot.slane %v59_v24, 4  ;;  %vm411_vm1 = vcmask 1040384  }
  0x80   :  { %64 = vst.msk [vmem:[#allocation2] sm:$0xe] %vm63_vm5, %v59_v24  ;;  %vm413_vm4 = vmor %vm411_vm1, %vm412_vm2  ;;  %vm421_vm5 = vcmask 59392  }
  0x81   :  { %78 = vst.msk [vmem:[#allocation2 + $0x8] sm:$0x7] %vm77_vm6, %v73_v25  ;;  %vm726_vm6 = vcmask 64516  }
  0x82   :  { %65 = vst.msk [vmem:[#allocation2 + $0x4] sm:$0x1] %vm52_vm0, %v60_v26  ;;  %vm333_vm0 = vcmask 60416  }
  0x84   :  { %v319_v62 = vpop.permute.xlu1 %318 }
  0x87   :  { %v82_v27 = vld [vmem:[#allocation2] sm:$0xf]  ;;  %v314_v11 = vpop.permute.xlu0 %313 }
  0x88   :  { %v224_v28 = vld [vmem:[#allocation2] sm:$0xc]  ;;  %v844_v33 = vld [vmem:[#allocation2 + $0x8] ss:$0 sps:$4 sm:$0x33]   ;;  %v324_v10 = vpop.permute.xlu1 %323 }
  0x89   :  { %v86_v29 = vld [vmem:[#allocation2] sm:$0xe]  ;;  %v83_v30 = vld [vmem:[#allocation2 + $0x4] sm:$0xf]  ;;  %v847_v36 = vld [vmem:[#allocation2 + $0x8] ss:$0 sps:$4 sm:$0xff]  }
  0x8a   :  { %v740_v31 = vcombine.low %v82_v27, %v83_v30  ;;  %v745_v32 = vcombine.low %v224_v28, %v83_v30  ;;  %v736_v34 = vcombine.low %v86_v29, %v83_v30  ;;  %v846_v35 = vld [vmem:[#allocation2 + $0x8] ss:$0 sps:$4 sm:$0x77]   ;;  %v236_v40 = vrot.slane %v847_v36, 2 }
  0x8b   :  { %v100_v39 = vrot.slane %v846_v35, 1 }
  0x8c   :  { %799 = vmatprep.mubr.msk.bf16.mxu1 %vm102_vm7, %v740_v31  ;;  %v235_v37 = vrot.slane %v745_v32, 2  ;;  %v99_v38 = vrot.slane %v736_v34, 1 }
  0x8d   :  { %800 = vmatmul.mubr.msk.bf16.vlgmr.msra.gmra.mrb[0].mxu1 %vm102_vm7, %v844_v33 }
  0x8e   :  { %v101_v41 = vsel %vm98_vm8, %v99_v38, %v100_v39  ;;  %v237_v42 = vsel %vm234_vm9, %v235_v37, %v236_v40  ;;  %810 = vmatpush3.bf16.msra.mxu1 %v453_v45 }
  0x8f   :  { %793 = vmatprep.mubr.msk.bf16.mxu0 %vm102_vm7, %v101_v41  ;;  %832 = vmatprep.subr.msk.bf16.mxu1 %vm451_vm12, %v762_v47  ;;  %v369_v47 = vlaneseq }
  0x90   :  { %794 = vmatmul.mubr.msk.bf16.vlgmr.msra.gmra.mrb[0].mxu0 %vm102_vm7, %v100_v39 }
  0x91   :  { %804 = vmatpush3.bf16.msra.mxu0 %v245_v9  ;;  %805 = vmatprep.mubr.msk.bf16.mxu0 %vm102_vm7, %v237_v42 }
  0x92   :  { %831 = vmatprep.subr.msk.bf16.mxu0 %vm451_vm12, %v429_v44 }
  0x98   :  { %806 = vmatmul.mubr.msk.bf16.vlgmr.msra.gmra.mrb[4].mxu0 %vm102_vm7, %v236_v40 }
  0x99   :  { %816 = vmatpush3.bf16.msra.mxu0 %v516_v46 }
 0x160   :  { %v801_v49 = vpop.f32.mrb[0].mxu1 }
 0x161   :  { %v210_v50 = vpop.f32.mrb[1].mxu1 }
 0x162   :  { %v802_v51 = vpop.f32.mrb[2].mxu1 }
 0x163   :  { %v795_v52 = vpop.f32.mrb[0].mxu0  ;;  %v213_v53 = vpop.f32.mrb[3].mxu1 }
 0x164   :  { %v219_v54 = vadd.f32 %v801_v49, %v795_v52  ;;  %v147_v55 = vpop.f32.mrb[1].mxu0  ;;  %v370_v49 = vshrl.u32 %v369_v47, 7 }
 0x165   :  { %v211_v56 = vadd.f32 %v210_v50, %v147_v55  ;;  %v796_v57 = vpop.f32.mrb[2].mxu0  ;;  %v361_v50 = vld [vmem:[%s1054_s5] sm:$0x1] }
 0x166   :  { %v150_v58 = vpop.f32.mrb[3].mxu0  ;;  %v1002_v51 = vsub.s32 0, %v370_v49 }
 0x167   :  { %v214_v59 = vadd.f32 %v213_v53, %v150_v58 }
 0x16b   :  { %v807_v60 = vpop.f32.mrb[4].mxu0 }
 0x16c   :  { %v297_v63 = vadd.f32 %v807_v60, %v219_v54  ;;  %v281_v0 = vpop.f32.mrb[5].mxu0  ;;  %v365_v54 = vld [vmem:[%s1055_s6] sm:$0x1] }
 0x16d   :  { %v295_v1 = vadd.f32 %v281_v0, %v211_v56  ;;  %v808_v2 = vpop.f32.mrb[6].mxu0 }
 0x16e   :  { %v307_v3 = vadd.f32 %v749_v61, %v297_v63  ;;  %v284_v4 = vpop.f32.mrb[7].mxu0 }
 0x16f   :  { %v305_v5 = vadd.f32 %v749_v61, %v295_v1  ;;  %v296_v6 = vadd.f32 %v284_v4, %v214_v59 }
 0x170   :  { %v310_v7 = vmax.f32 %v307_v3, 0.0 }
 0x171   :  { %v306_v8 = vadd.f32 %v749_v61, %v296_v6  ;;  %v308_v9 = vmax.f32 %v305_v5, 0.0 }
 0x172   :  { %v328_v12 = vmul.f32 %v324_v10, %v310_v7 }
 0x173   :  { %v309_v13 = vmax.f32 %v306_v8, 0.0  ;;  %v326_v14 = vmul.f32 %v314_v11, %v308_v9 }
 0x174   :  { %v345_v17 = vmul.f32 %v328_v12, %v328_v12  ;;  %v334_v22 = vsel %vm333_vm0, %v328_v12, 0.0 }
 0x175   :  { %v327_v15 = vmul.f32 %v319_v62, %v309_v13  ;;  %v343_v16 = vmul.f32 %v326_v14, %v326_v14  ;;  %v330_v19 = vsel %vm329_vm15, %v326_v14, 0.0 }
 0x176   :  { %v349_v27 = vsel %vm333_vm0, %v345_v17, 0.0 }
 0x177   :  { %v344_v18 = vmul.f32 %v327_v15, %v327_v15  ;;  %v331_v20 = vsel %vm329_vm15, %v327_v15, 0.0  ;;  %v346_v23 = vsel %vm329_vm15, %v343_v16, 0.0 }
 0x178   :  { %v332_v21 = vadd.f32 %v331_v20, %v330_v19 }
 0x179   :  { %v347_v24 = vsel %vm329_vm15, %v344_v18, 0.0 }
 0x17a   :  { %v335_v25 = vadd.f32 %v334_v22, %v332_v21  ;;  %v348_v26 = vadd.f32 %v347_v24, %v346_v23 }
 0x17c   :  { %v336_v28 = vrot.slane %v335_v25, 4  ;;  %v350_v29 = vadd.f32 %v349_v27, %v348_v26 }
 0x17e   :  { %v337_v30 = vadd.f32 %v336_v28, %v335_v25  ;;  %v351_v31 = vrot.slane %v350_v29, 4 }
 0x180   :  { %v338_v32 = vrot.slane %v337_v30, 2  ;;  %v352_v33 = vadd.f32 %v351_v31, %v350_v29 }
 0x182   :  { %v339_v34 = vadd.f32 %v338_v32, %v337_v30  ;;  %v353_v35 = vrot.slane %v352_v33, 2 }
 0x184   :  { %v340_v36 = vrot.slane %v339_v34, 1  ;;  %v354_v37 = vadd.f32 %v353_v35, %v352_v33 }
 0x186   :  { %v341_v38 = vadd.f32 %v340_v36, %v339_v34  ;;  %v355_v39 = vrot.slane %v354_v37, 1 }
 0x188   :  { %v342_v40 = vmul.f32 0.0625, %v341_v38  ;;  %v356_v41 = vadd.f32 %v355_v39, %v354_v37  ;;  %v655_v38 = vpop.permute.xlu1 %654 }
 0x18a   :  { %v357_v42 = vmul.f32 0.0625, %v356_v41  ;;  %v358_v43 = vmul.f32 %v342_v40, %v342_v40 }
 0x18c   :  { %v359_v44 = vsub.f32 %v357_v42, %v358_v43 }
 0x18e   :  { %v360_v45 = vmax.f32 %v359_v44, 0.0 }
 0x190   :  { %v362_v46 = vadd.f32 1e-05, %v360_v45 }
 0x192   :  { %854 = vrsqrt.f32 %v362_v46 }
 0x19c   :  { %v855_v52 = vpop.eup %854 }
 0x19d   :  { %v364_v53 = vmul.f32 %v855_v52, %v361_v50  ;;  %v665_v52 = vpop.permute.xlu1 %664 }
 0x19f   :  { %v366_v55 = vmul.f32 %v364_v53, %v342_v40  ;;  %v372_v56 = vrot.slane %v364_v53, %v1002_v51 }
 0x1a1   :  { %v367_v57 = vsub.f32 %v365_v54, %v366_v55  ;;  %v374_v58 = vmul.f32 %v372_v56, %v326_v14  ;;  %v375_v59 = vmul.f32 %v372_v56, %v327_v15  ;;  %v376_v60 = vmul.f32 %v372_v56, %v328_v12  ;;  %v660_v56 = vpop.permute.xlu0 %659 }
 0x1a3   :  { %v381_v61 = vrot.slane %v367_v57, %v1002_v51 }
 0x1a5   :  { %v383_v62 = vadd.f32 %v381_v61, %v374_v58  ;;  %v384_v63 = vadd.f32 %v381_v61, %v375_v59  ;;  %v385_v0 = vadd.f32 %v381_v61, %v376_v60 }
 0x1a7   :  { %v770_v1 = vpack.c.bf16 %v383_v62, %v383_v62  ;;  %v771_v2 = vpack.c.bf16 %v384_v63, %v384_v63  ;;  %v772_v3 = vpack.c.bf16 %v385_v0, %v385_v0 }
 0x1a9   :  { %v395_v4 = vrot.slane %v770_v1, 7  ;;  %v414_v5 = vrot.slane %v771_v2, 7  ;;  %v416_v8 = vrot.slane %v772_v3, 7 }
 0x1ab   :  { %v396_v6 = vrot.slane %v395_v4, 4  ;;  %400 = vst.msk [vmem:[#allocation3] sm:$0xe] %vm399_vm3, %v395_v4  ;;  %v415_v7 = vrot.slane %v414_v5, 4 }
 0x1ac   :  { %420 = vst.msk [vmem:[#allocation3 + $0x4] sm:$0x8] %vm404_vm11, %v414_v5 }
 0x1ad   :  { %401 = vst.msk [vmem:[#allocation3 + $0x4] sm:$0x1] %vm388_vm10, %v396_v6  ;;  %v417_v9 = vsel %vm413_vm4, %v415_v7, %v416_v8 }
 0x1ae   :  { %422 = vst.msk [vmem:[#allocation3 + $0x8] sm:$0x7] %vm421_vm5, %v417_v9 }
 0x1b2   :  { %v426_v10 = vld [vmem:[#allocation3] sm:$0xf] }
 0x1b3   :  { %v430_v12 = vld [vmem:[#allocation3] sm:$0xe] }
 0x1b4   :  { %v427_v11 = vld [vmem:[#allocation3 + $0x4] sm:$0xf]  ;;  %v566_v13 = vld [vmem:[#allocation3] sm:$0xc] }
 0x1b5   :  { %v758_v14 = vcombine.low %v426_v10, %v427_v11  ;;  %v849_v15 = vld [vmem:[#allocation3 + $0x8] ss:$0 sps:$4 sm:$0x33]   ;;  %v754_v16 = vcombine.low %v430_v12, %v427_v11  ;;  %v763_v17 = vcombine.low %v566_v13, %v427_v11 }
 0x1b6   :  { %v851_v18 = vld [vmem:[#allocation3 + $0x8] ss:$0 sps:$4 sm:$0x77]  }
 0x1b7   :  { %817 = vmatprep.mubr.msk.bf16.mxu0 %vm329_vm15, %v758_v14  ;;  %v442_v19 = vrot.slane %v754_v16, 1  ;;  %v853_v20 = vld [vmem:[#allocation3 + $0x8] ss:$0 sps:$4 sm:$0xff]   ;;  %v443_v21 = vrot.slane %v851_v18, 1  ;;  %v576_v22 = vrot.slane %v763_v17, 2 }
 0x1b8   :  { %818 = vmatmul.mubr.msk.bf16.vlgmr.msra.gmra.mrb[8].mxu0 %vm329_vm15, %v849_v15  ;;  %v577_v23 = vrot.slane %v853_v20, 2 }
 0x1b9   :  { %v444_v24 = vsel %vm98_vm8, %v442_v19, %v443_v21 }
 0x1ba   :  { %811 = vmatprep.mubr.msk.bf16.mxu1 %vm329_vm15, %v444_v24  ;;  %v578_v25 = vsel %vm234_vm9, %v576_v22, %v577_v23 }
 0x1bb   :  { %812 = vmatmul.mubr.msk.bf16.vlgmr.msra.gmra.mrb[4].mxu1 %vm329_vm15, %v443_v21 }
 0x1bc   :  { %822 = vmatpush3.bf16.msra.mxu1 %v988_v48  ;;  %823 = vmatprep.mubr.msk.bf16.mxu1 %vm329_vm15, %v578_v25  ;;  %v767_v48 = vld [vmem:[%s1056_s8] ss:$0 sm:$0xff] }
 0x1bd   :  { %v700_v25 = vld [vmem:[%s1057_s9] sm:$0x1] }
 0x1c3   :  { %824 = vmatmul.mubr.msk.bf16.vlgmr.msra.gmra.mrb[8].mxu1 %vm329_vm15, %v577_v23 }
 0x28b   :  { %v819_v26 = vpop.f32.mrb[8].mxu0 }
 0x28c   :  { %v552_v27 = vpop.f32.mrb[9].mxu0 }
 0x28d   :  { %v820_v28 = vpop.f32.mrb[10].mxu0 }
 0x28e   :  { %v555_v29 = vpop.f32.mrb[11].mxu0  ;;  %v813_v30 = vpop.f32.mrb[4].mxu1  ;;  %v704_v28 = vld [vmem:[%s1058_s10] sm:$0x1] }
 0x28f   :  { %v561_v31 = vadd.f32 %v819_v26, %v813_v30  ;;  %v489_v32 = vpop.f32.mrb[5].mxu1 }
 0x290   :  { %v553_v33 = vadd.f32 %v552_v27, %v489_v32  ;;  %v814_v34 = vpop.f32.mrb[6].mxu1 }
 0x291   :  { %v492_v35 = vpop.f32.mrb[7].mxu1 }
 0x292   :  { %v556_v36 = vadd.f32 %v555_v29, %v492_v35 }
 0x296   :  { %v825_v37 = vpop.f32.mrb[8].mxu1 }
 0x297   :  { %v638_v39 = vadd.f32 %v825_v37, %v561_v31  ;;  %v622_v40 = vpop.f32.mrb[9].mxu1 }
 0x298   :  { %v636_v41 = vadd.f32 %v622_v40, %v553_v33  ;;  %v826_v42 = vpop.f32.mrb[10].mxu1 }
 0x299   :  { %v648_v43 = vadd.f32 %v767_v48, %v638_v39  ;;  %v625_v44 = vpop.f32.mrb[11].mxu1 }
 0x29a   :  { %v646_v45 = vadd.f32 %v767_v48, %v636_v41  ;;  %v637_v46 = vadd.f32 %v625_v44, %v556_v36 }
 0x29b   :  { %v651_v47 = vmax.f32 %v648_v43, 0.0 }
 0x29c   :  { %v649_v49 = vmax.f32 %v646_v45, 0.0  ;;  %v647_v50 = vadd.f32 %v767_v48, %v637_v46 }
 0x29d   :  { %v669_v53 = vmul.f32 %v665_v52, %v651_v47 }
 0x29e   :  { %v667_v54 = vmul.f32 %v655_v38, %v649_v49  ;;  %v650_v55 = vmax.f32 %v647_v50, 0.0 }
 0x29f   :  { %v684_v59 = vmul.f32 %v669_v53, %v669_v53  ;;  %v673_v0 = vsel %vm333_vm0, %v669_v53, 0.0 }
 0x2a0   :  { %v682_v57 = vmul.f32 %v667_v54, %v667_v54  ;;  %v668_v58 = vmul.f32 %v660_v56, %v650_v55  ;;  %v670_v60 = vsel %vm329_vm15, %v667_v54, 0.0 }
 0x2a1   :  { %v688_v5 = vsel %vm333_vm0, %v684_v59, 0.0 }
 0x2a2   :  { %v671_v61 = vsel %vm329_vm15, %v668_v58, 0.0  ;;  %v683_v62 = vmul.f32 %v668_v58, %v668_v58  ;;  %v685_v1 = vsel %vm329_vm15, %v682_v57, 0.0 }
 0x2a3   :  { %v672_v63 = vadd.f32 %v671_v61, %v670_v60 }
 0x2a4   :  { %v686_v2 = vsel %vm329_vm15, %v683_v62, 0.0 }
 0x2a5   :  { %v674_v3 = vadd.f32 %v673_v0, %v672_v63  ;;  %v687_v4 = vadd.f32 %v686_v2, %v685_v1 }
 0x2a7   :  { %v675_v6 = vrot.slane %v674_v3, 4  ;;  %v689_v7 = vadd.f32 %v688_v5, %v687_v4 }
 0x2a9   :  { %v676_v8 = vadd.f32 %v675_v6, %v674_v3  ;;  %v690_v9 = vrot.slane %v689_v7, 4 }
 0x2ab   :  { %v677_v10 = vrot.slane %v676_v8, 2  ;;  %v691_v11 = vadd.f32 %v690_v9, %v689_v7 }
 0x2ad   :  { %v678_v12 = vadd.f32 %v677_v10, %v676_v8  ;;  %v692_v13 = vrot.slane %v691_v11, 2 }
 0x2af   :  { %v679_v14 = vrot.slane %v678_v12, 1  ;;  %v693_v15 = vadd.f32 %v692_v13, %v691_v11 }
 0x2b1   :  { %v680_v16 = vadd.f32 %v679_v14, %v678_v12  ;;  %v694_v17 = vrot.slane %v693_v15, 1 }
 0x2b3   :  { %v681_v18 = vmul.f32 0.0625, %v680_v16  ;;  %v695_v19 = vadd.f32 %v694_v17, %v693_v15 }
 0x2b5   :  { %v696_v20 = vmul.f32 0.0625, %v695_v19  ;;  %v697_v21 = vmul.f32 %v681_v18, %v681_v18 }
 0x2b7   :  { %v698_v22 = vsub.f32 %v696_v20, %v697_v21 }
 0x2b9   :  { %v699_v23 = vmax.f32 %v698_v22, 0.0 }
 0x2bb   :  { %v701_v24 = vadd.f32 1e-05, %v699_v23 }
 0x2bd   :  { %856 = vrsqrt.f32 %v701_v24 }
 0x2c7   :  { %v857_v26 = vpop.eup %856 }
 0x2c8   :  { %v703_v27 = vmul.f32 %v857_v26, %v700_v25 }
 0x2ca   :  { %v705_v29 = vmul.f32 %v703_v27, %v681_v18  ;;  %v711_v30 = vrot.slane %v703_v27, %v1002_v51 }
 0x2cc   :  { %v706_v31 = vsub.f32 %v704_v28, %v705_v29  ;;  %v713_v32 = vmul.f32 %v711_v30, %v667_v54  ;;  %v714_v33 = vmul.f32 %v711_v30, %v668_v58  ;;  %v715_v34 = vmul.f32 %v711_v30, %v669_v53 }
 0x2ce   :  { %v720_v35 = vrot.slane %v706_v31, %v1002_v51 }
 0x2d0   :  { %v722_v36 = vadd.f32 %v720_v35, %v713_v32  ;;  %v723_v37 = vadd.f32 %v720_v35, %v714_v33  ;;  %v724_v48 = vadd.f32 %v720_v35, %v715_v34 }
 0x2d2   :  { %725 = vst.msk [vmem:[%s1059_s11] sm:$0xff] %vm329_vm15, %v722_v36 }
 0x2d3   :  { %727 = vst.msk [vmem:[%s1059_s11 + $0x4] sm:$0xf0] %vm726_vm6, %v723_v37 }
 0x2d4   :  { %728 = vst.msk [vmem:[%s1059_s11 + $0xc] sm:$0xf] %vm333_vm0, %v724_v48 }

</bundles_post_ra>
